<compile_context>
chip_gen: v6e
topology: v6e:2x2x1
jax: 0.10.0
libtpu: 0.0.40
codegen_flags: <defaults>
</compile_context>

<pallas_src>
import numpy as np
import jax
import jax.numpy as jnp
from jax.experimental import pallas as pl
from jax.experimental.pallas import tpu as pltpu

LANE = 128          # vreg lane width (fast axis)
MAX_TILE_ROWS = 512 # 512 * 128 * 4 B = 256 KiB per buffer


def _copy_kernel(x_ref, o_ref):
    # Lane-dense identity copy: full-width unmasked loads/stores.
    o_ref[...] = x_ref[...]


def pallas_reshape(x, out_shape):
    """Pallas equivalent of torch `x.view(-1, *out_shape)`.

    The data layout of a row-major reshape is unchanged, so the kernel is a
    lane-dense (rows, 128) identity copy; the target shape is applied as a
    zero-cost metadata reshape in the wrapper.
    """
    out_shape = tuple(int(d) for d in out_shape)
    total = int(np.prod(x.shape))
    inner = int(np.prod(out_shape)) if out_shape else 1
    if inner == 0 or total % inner != 0:
        raise ValueError(f"cannot view shape {x.shape} as (-1, {out_shape})")
    lead = total // inner

    # Sublane packing multiple depends on dtype width (f32:8, bf16:16, int8:32).
    itemsize = jnp.dtype(x.dtype).itemsize
    sub = {4: 8, 2: 16, 1: 32}.get(itemsize, 8)

    rows = -(-total // LANE)               # ceil(total / 128)
    rows = -(-rows // sub) * sub           # round up to sublane-pack multiple
    tile_r = rows if rows <= MAX_TILE_ROWS else MAX_TILE_ROWS
    rows = -(-rows // tile_r) * tile_r     # make the grid divide evenly
    padded = rows * LANE

    flat = x.reshape(total)
    if padded != total:
        flat = jnp.concatenate(
            [flat, jnp.zeros((padded - total,), dtype=x.dtype)])
    x2 = flat.reshape(rows, LANE)          # lane-dense staging slab

    y2 = pl.pallas_call(
        _copy_kernel,
        out_shape=jax.ShapeDtypeStruct((rows, LANE), x.dtype),
        grid=(rows // tile_r,),
        in_specs=[pl.BlockSpec((tile_r, LANE), lambda i: (i, 0))],
        out_specs=pl.BlockSpec((tile_r, LANE), lambda i: (i, 0)),
        compiler_params=pltpu.CompilerParams(
            dimension_semantics=("parallel",)),   # megacore split on v7x
    )(x2)

    y = y2.reshape(padded)
    if padded != total:
        y = y[:total]
    return y.reshape((lead,) + out_shape)


if __name__ == "__main__":
    key = jax.random.PRNGKey(0)
    k1, k2 = jax.random.split(key)

    # Case 1: generic small shape — (2, 1024) viewed as (-1, 4, 16, 16).
    x1 = jax.random.normal(k1, (2, 4 * 16 * 16), jnp.float32)
    out1 = jax.jit(lambda a: pallas_reshape(a, (4, 16, 16)))(x1)
    jax.block_until_ready(out1)
    ref1 = jnp.reshape(x1, (-1, 4, 16, 16))
    assert out1.shape == (2, 4, 16, 16), out1.shape
    assert bool(jnp.array_equal(out1, ref1))

    # Case 2: the fAnoGAN generator usage — Linear output (2, 32) viewed as
    # (-1, 8, 2, 2), i.e. Reshape((channels[-1], h, w)).
    x2 = jax.random.normal(k2, (2, 8 * 2 * 2), jnp.float32)
    out2 = jax.jit(lambda a: pallas_reshape(a, (8, 2, 2)))(x2)
    jax.block_until_ready(out2)
    ref2 = jnp.reshape(x2, (-1, 8, 2, 2))
    assert out2.shape == (2, 8, 2, 2), out2.shape
    assert bool(jnp.array_equal(out2, ref2))

    print("KERNEL_OK")
</pallas_src>

<mosaic_0001>
module attributes {stable_mosaic.version = 11 : i64} {
  func.func @_copy_kernel(%arg0: i32, %arg1: memref<16x128xf32, #tpu.memory_space<vmem>>, %arg2: memref<16x128xf32, #tpu.memory_space<vmem>>) attributes {dimension_semantics = [#tpu.dimension_semantics<parallel>], iteration_bounds = array<i64: 1>, scalar_prefetch = 0 : i64, scratch_operands = 0 : i64, tpu.core_type = #tpu.core_type<tc>, window_params = [{transform_indices = @transform_0, window_bounds = array<i64: 16, 128>}, {transform_indices = @transform_1, window_bounds = array<i64: 16, 128>}]} {
    %c0 = arith.constant 0 : index
    %c0_0 = arith.constant 0 : index
    %0 = vector.load %arg1[%c0, %c0_0] : memref<16x128xf32, #tpu.memory_space<vmem>>, vector<16x128xf32>
    %c0_1 = arith.constant 0 : index
    %c0_2 = arith.constant 0 : index
    %1 = vector.load %arg2[%c0_1, %c0_2] : memref<16x128xf32, #tpu.memory_space<vmem>>, vector<16x128xf32>
    tpu.vector_store %arg2[%c0_1, %c0_2], %0 {strides = array<i32>} : memref<16x128xf32, #tpu.memory_space<vmem>>, vector<16x128xf32>,
    return
  }
  func.func @transform_0(%arg0: i32) -> (i32, i32) {
    %c0_i32 = arith.constant 0 : i32
    %c0_i32_0 = arith.constant 0 : i32
    return %arg0, %c0_i32 : i32, i32
  }
  func.func @transform_1(%arg0: i32) -> (i32, i32) {
    %c0_i32 = arith.constant 0 : i32
    %c0_i32_0 = arith.constant 0 : i32
    return %arg0, %c0_i32 : i32, i32
  }
}

</mosaic_0001>

<bundles_post_ra>
// kernel: _lambda_.1
= control target key start
LH: loop header
LB: loop body
LE: loop exit
PB: predicated region body
PF: predicated region fallthrough
CT: control target
= control target key end

     0   :  { %s38_s0 = inlined_call_operand.vmem [shape: f32[16,128], index: 0, kind: input, shape index: {}]   ;;  %s39_s1 = inlined_call_operand.vmem [shape: f32[16,128], index: 1, kind: output, shape index: {}]  }
   0x1   :  { %v8_v0 = vld [vmem:[%s38_s0] sm:$0xff]  ;;  %v9_v1 = vld [vmem:[%s38_s0 + $0x8] sm:$0xff] }
   0x2   :  { %10 = vst [vmem:[%s39_s1] sm:$0xff] %v8_v0  ;;  %11 = vst [vmem:[%s39_s1 + $0x8] sm:$0xff] %v9_v1 }

</bundles_post_ra>
